<compile_context>
chip_gen: v7x
topology: tpu7x:2x2x1
jax: 0.10.0
libtpu: 0.0.40
codegen_flags: <defaults>
</compile_context>

<pallas_src>
import functools

import jax
import jax.numpy as jnp
import numpy as np
from jax import lax
from jax.experimental import pallas as pl
from jax.experimental.pallas import tpu as pltpu


def _round_up(x, m):
    return (x + m - 1) // m * m


# ----------------------------------------------------------------------------
# Pallas kernel: one grid step == one (type-sorted) batch element.
# All per-type weights arrive pre-selected by scalar-prefetch-driven index_maps.
# ----------------------------------------------------------------------------
def _moe_kernel(idx_ref, h_ref, wi_ref, wo_ref, gall_ref, g2_ref, o_ref, *, d_ff):
    # idx_ref (SMEM, [B] int32) only drives the BlockSpec index_maps.
    del idx_ref
    F = d_ff
    f_all = wi_ref.shape[-1]                     # padded 5F

    h = h_ref[0].astype(jnp.bfloat16)            # (S, D)   cast in-kernel
    wi = wi_ref[0]                               # (D, F_all)    bf16
    wo = wo_ref[0]                               # (F_all, Dp)   bf16 (wp folded in)
    g_all = gall_ref[0]                          # (F_all, D)    bf16 (G1 folded in)
    g2 = g2_ref[...]                             # (D, 4)        bf16

    # ---- ONE fused first matmul over {routed pair, 3 shared experts} + relu ----
    a = jnp.maximum(jnp.dot(h, wi, preferred_element_type=jnp.float32), 0.0)   # (S, F_all)

    # ---- gate MLP (first layer folded into g_all), driven by row-0 activations ----
    a0 = a[0:1].astype(jnp.bfloat16)                                             # (1, F_all)
    gh = jnp.maximum(jnp.dot(a0, g_all, preferred_element_type=jnp.float32), 0.0)    # (1, D)
    gl = jnp.dot(gh.astype(jnp.bfloat16), g2, preferred_element_type=jnp.float32)    # (1, 4)
    gl = gl - jnp.max(gl, axis=-1, keepdims=True)
    ge = jnp.exp(gl)
    gw = ge / jnp.sum(ge, axis=-1, keepdims=True)        # exact softmax (4 lanes: free)

    # ---- per lane-block mixing coefficients [gw0 gw0 | gw1 | gw2 | gw3 | pad] ----
    lanes = lax.broadcasted_iota(jnp.int32, (1, f_all), 1)
    coef = jnp.where(lanes < 2 * F, gw[:, 0:1],
           jnp.where(lanes < 3 * F, gw[:, 1:2],
           jnp.where(lanes < 4 * F, gw[:, 2:3], gw[:, 3:4])))

    # ---- ONE fused second matmul (lane-dense padded output columns) ----
    a_sc = (a * coef).astype(jnp.bfloat16)                                       # (S, F_all)
    out = jnp.dot(a_sc, wo, preferred_element_type=jnp.float32)                  # (S, Dp)
    o_ref[0] = out.astype(o_ref.dtype)


# ----------------------------------------------------------------------------
# Wrapper: weight folding / padding (once per call under jit) + pallas_call.
# ----------------------------------------------------------------------------
@jax.jit
def mta_sharemoe4_forward(hidden_states, type_idx, params):
    """hidden_states: [B, S, D] f32; type_idx: [B] int32 in {0, 1, 2}."""
    B, S, D = hidden_states.shape
    E, _, F = params["Wi_exp"].shape
    n_types = E - 1                     # routed pairs (t, t+1), t in [0, E-2]
    D_pad = _round_up(D, 128)           # lane-dense output store
    F_all = _round_up(5 * F, 128)       # aligned fused contraction width

    # fixed per-type gating scalars: softmax(type_gate / 0.1)
    sm = jax.nn.softmax(params["gate_vecs"] / 0.1, axis=-1)            # (n_types, 4)

    g1 = params["G1"]                                                  # (4D, D) f32
    wi_sh = params["Wi_share"]                                         # (3, D, F)
    wo_sh = params["Wo_share"]                                         # (3, F, D)

    def build_type(t):
        # All folds done in f32; cast to bf16 only after padding.
        wo_pair = jnp.concatenate([sm[t, t] * params["Wo_exp"][t],
                                   sm[t, t + 1] * params["Wo_exp"][t + 1]], axis=0)   # (2F, D)
        wi_all = jnp.concatenate([params["Wi_exp"][t], params["Wi_exp"][t + 1],
                                  wi_sh[0], wi_sh[1], wi_sh[2]], axis=-1)             # (D, 5F)
        wo_all = jnp.concatenate([wo_pair, wo_sh[0], wo_sh[1], wo_sh[2]], axis=0)     # (5F, D)
        g_all = jnp.concatenate(
            [wo_pair @ g1[0:D],
             wo_sh[0] @ g1[D:2 * D],
             wo_sh[1] @ g1[2 * D:3 * D],
             wo_sh[2] @ g1[3 * D:4 * D]], axis=0)                                     # (5F, D)
        return wi_all, wo_all, g_all

    wi_l, wo_l, ga_l = zip(*(build_type(t) for t in range(n_types)))
    wi_all = jnp.stack(wi_l)                                           # (n_types, D, 5F)
    wo_all = jnp.stack(wo_l)                                           # (n_types, 5F, D)
    g_all = jnp.stack(ga_l)                                            # (n_types, 5F, D)

    # zero-pad to lane-aligned shapes (no semantic effect: zero rows/cols)
    wi_all = jnp.pad(wi_all, ((0, 0), (0, 0), (0, F_all - 5 * F))).astype(jnp.bfloat16)
    wo_all = jnp.pad(wo_all, ((0, 0), (0, F_all - 5 * F), (0, D_pad - D))).astype(jnp.bfloat16)
    g_all = jnp.pad(g_all, ((0, 0), (0, F_all - 5 * F), (0, 0))).astype(jnp.bfloat16)
    g2 = params["G2"].astype(jnp.bfloat16)                             # (D, 4)

    # Clamp type indices (invalid indices map to a valid expert instead of OOB DMA)
    # TODO(synk): invalid upstream type indices are silently clamped, not reported.
    idx = jnp.clip(type_idx.astype(jnp.int32), 0, n_types - 1)

    # Sort batch by routed type: consecutive grid steps with the same type reuse the
    # already-DMA'd weight block (Pallas skips the copy when the block index repeats).
    order = jnp.argsort(idx)
    inv_order = jnp.argsort(order)
    h_sorted = jnp.take(hidden_states, order, axis=0)
    idx_sorted = jnp.take(idx, order)

    routed = lambda b, t: (t[b], 0, 0)          # scalar-prefetch-driven weight selection

    grid_spec = pltpu.PrefetchScalarGridSpec(
        num_scalar_prefetch=1,                  # idx_sorted -> SMEM, feeds index_maps
        grid=(B,),
        in_specs=[
            pl.BlockSpec((1, S, D), lambda b, t: (b, 0, 0)),       # hidden (f32, cast in-kernel)
            pl.BlockSpec((1, D, F_all), routed),                   # Wi_all[idx]
            pl.BlockSpec((1, F_all, D_pad), routed),               # Wo_all[idx] (wp folded)
            pl.BlockSpec((1, F_all, D), routed),                   # G_all[idx]  (G1 folded)
            pl.BlockSpec((D, 4), lambda b, t: (0, 0)),             # G2 (resident)
        ],
        out_specs=pl.BlockSpec((1, S, D_pad), lambda b, t: (b, 0, 0)),
    )

    out_sorted = pl.pallas_call(
        functools.partial(_moe_kernel, d_ff=F),
        out_shape=jax.ShapeDtypeStruct((B, S, D_pad), hidden_states.dtype),
        grid_spec=grid_spec,
        compiler_params=pltpu.CompilerParams(
            dimension_semantics=("parallel",),          # 2 TensorCores on v7x
            vmem_limit_bytes=32 * 1024 * 1024),         # re-derive for production D/F
    )(idx_sorted, h_sorted, wi_all, wo_all, g_all, g2)

    # unsort and drop the lane padding
    return jnp.take(out_sorted[..., :D], inv_order, axis=0)


# ----------------------------------------------------------------------------
# Pure-JAX reference (mirrors the PyTorch forward, eval mode, f32)
# ----------------------------------------------------------------------------
def reference_forward(hidden_states, type_idx, params):
    sm = jax.nn.softmax(params["gate_vecs"] / 0.1, axis=-1)

    def ffn(x, wi, wo):
        return jnp.maximum(x @ wi, 0.0) @ wo

    outs = []
    for i in range(hidden_states.shape[0]):
        idx = int(type_idx[i])
        h = hidden_states[i]
        e0 = ffn(h, params["Wi_exp"][idx], params["Wo_exp"][idx])
        e1 = ffn(h, params["Wi_exp"][idx + 1], params["Wo_exp"][idx + 1])
        expert_out = e0 * sm[idx, idx] + e1 * sm[idx, idx + 1]
        s = [ffn(h, params["Wi_share"][k], params["Wo_share"][k]) for k in range(3)]
        gate_in = jnp.concatenate([expert_out[0], s[0][0], s[1][0], s[2][0]], 0)
        gh = jnp.maximum(gate_in @ params["G1"], 0.0)
        gw = jax.nn.softmax(gh @ params["G2"], axis=-1)
        outs.append(expert_out * gw[0] + s[0] * gw[1] + s[1] * gw[2] + s[2] * gw[3])
    return jnp.stack(outs)


# ----------------------------------------------------------------------------
# Main
# ----------------------------------------------------------------------------
if __name__ == "__main__":
    # config (small, consistent with the module): my_hidden_size == d_model
    B, S = 2, 8
    D, F = 32, 64           # d_model, d_ff
    NUM_EXPERTS = 4

    key = jax.random.PRNGKey(0)
    ks = jax.random.split(key, 8)
    scale = 0.05
    params = {
        # routed experts (stacked): torch wi.weight is (F, D) -> stored as (D, F)
        "Wi_exp": jax.random.normal(ks[0], (NUM_EXPERTS, D, F), jnp.float32) * scale,
        "Wo_exp": jax.random.normal(ks[1], (NUM_EXPERTS, F, D), jnp.float32) * scale,
        # 3 shared experts
        "Wi_share": jax.random.normal(ks[2], (3, D, F), jnp.float32) * scale,
        "Wo_share": jax.random.normal(ks[3], (3, F, D), jnp.float32) * scale,
        # shared gate MLP (same module reused for every gates[f'gate_{idx}'])
        "G1": jax.random.normal(ks[4], (4 * D, D), jnp.float32) * scale,
        "G2": jax.random.normal(ks[5], (D, 4), jnp.float32) * scale,
        # fixed type gates: gate_for_classify / nli / generate
        "gate_vecs": jnp.array(
            [[0.22, 0.22, 0.20, 0.20],
             [0.20, 0.22, 0.22, 0.20],
             [0.20, 0.20, 0.22, 0.22]], jnp.float32),
    }

    hidden_states = jax.random.normal(ks[6], (B, S, D), jnp.float32)
    # type_label = ["classify", "generate"]  ->  indices into type_list
    type_idx = jnp.array([0, 2], jnp.int32)

    out = mta_sharemoe4_forward(hidden_states, type_idx, params)
    out = jax.block_until_ready(out)

    ref = reference_forward(hidden_states, type_idx, params)
    # bf16 MXU operands (f32 accumulation) + f32->bf16 folded weights -> loosened tol
    np.testing.assert_allclose(np.asarray(out), np.asarray(ref), atol=2e-2, rtol=2e-2)

    # TODO(synk): torch Dropout inside T5DenseActDense is treated as identity (eval mode).
    print("KERNEL_OK")
</pallas_src>

<mosaic_0001>
module attributes {stable_mosaic.version = 11 : i64} {
  func.func @_moe_kernel(%arg0: i32, %arg1: memref<2xi32, #tpu.memory_space<smem>>, %arg2: memref<1x8x32xf32, #tpu.memory_space<vmem>>, %arg3: memref<1x32x384xbf16, #tpu.memory_space<vmem>>, %arg4: memref<1x384x128xbf16, #tpu.memory_space<vmem>>, %arg5: memref<1x384x32xbf16, #tpu.memory_space<vmem>>, %arg6: memref<32x4xbf16, #tpu.memory_space<vmem>>, %arg7: memref<1x8x128xf32, #tpu.memory_space<vmem>>) attributes {dimension_semantics = [#tpu.dimension_semantics<parallel>], iteration_bounds = array<i64: 2>, scalar_prefetch = 1 : i64, scratch_operands = 0 : i64, tpu.core_type = #tpu.core_type<tc>, window_params = [{transform_indices = @transform_0, window_bounds = array<i64: 1, 8, 32>}, {transform_indices = @transform_1, window_bounds = array<i64: 1, 32, 384>}, {transform_indices = @transform_2, window_bounds = array<i64: 1, 384, 128>}, {transform_indices = @transform_3, window_bounds = array<i64: 1, 384, 32>}, {pipeline_mode = #tpu.pipeline_mode<synchronous>, transform_indices = @transform_4, window_bounds = array<i64: 32, 4>}, {transform_indices = @transform_5, window_bounds = array<i64: 1, 8, 128>}]} {
    %c0 = arith.constant 0 : index
    %c0_0 = arith.constant 0 : index
    %c0_1 = arith.constant 0 : index
    %0 = vector.load %arg2[%c0, %c0_0, %c0_1] : memref<1x8x32xf32, #tpu.memory_space<vmem>>, vector<1x8x32xf32>
    %1 = vector.shape_cast %0 : vector<1x8x32xf32> to vector<8x32xf32>
    %2 = arith.truncf %1 : vector<8x32xf32> to vector<8x32xbf16>
    %c0_2 = arith.constant 0 : index
    %c0_3 = arith.constant 0 : index
    %c0_4 = arith.constant 0 : index
    %3 = vector.load %arg3[%c0_2, %c0_3, %c0_4] : memref<1x32x384xbf16, #tpu.memory_space<vmem>>, vector<1x32x384xbf16>
    %4 = vector.shape_cast %3 : vector<1x32x384xbf16> to vector<32x384xbf16>
    %c0_5 = arith.constant 0 : index
    %c0_6 = arith.constant 0 : index
    %c0_7 = arith.constant 0 : index
    %5 = vector.load %arg4[%c0_5, %c0_6, %c0_7] : memref<1x384x128xbf16, #tpu.memory_space<vmem>>, vector<1x384x128xbf16>
    %6 = vector.shape_cast %5 : vector<1x384x128xbf16> to vector<384x128xbf16>
    %c0_8 = arith.constant 0 : index
    %c0_9 = arith.constant 0 : index
    %c0_10 = arith.constant 0 : index
    %7 = vector.load %arg5[%c0_8, %c0_9, %c0_10] : memref<1x384x32xbf16, #tpu.memory_space<vmem>>, vector<1x384x32xbf16>
    %8 = vector.shape_cast %7 : vector<1x384x32xbf16> to vector<384x32xbf16>
    %c0_11 = arith.constant 0 : index
    %c0_12 = arith.constant 0 : index
    %9 = vector.load %arg6[%c0_11, %c0_12] : memref<32x4xbf16, #tpu.memory_space<vmem>>, vector<32x4xbf16>
    %cst = arith.constant dense<0.000000e+00> : vector<8x384xf32>
    %10 = tpu.matmul %2, %4, %cst {dimension_numbers = #tpu.dot_dimension_numbers<[1], [0], [0], [1], [0, 0, 1, 1], [], []>} : vector<8x32xbf16>, vector<32x384xbf16>, vector<8x384xf32> -> vector<8x384xf32>
    %cst_13 = arith.constant 0.000000e+00 : f32
    %11 = vector.broadcast %cst_13 : f32 to vector<8x384xf32>
    %12 = arith.maximumf %10, %11 : vector<8x384xf32>
    %13 = vector.extract_strided_slice %12 {offsets = [0, 0], sizes = [1, 384], strides = [1, 1]} : vector<8x384xf32> to vector<1x384xf32>
    %14 = arith.truncf %13 : vector<1x384xf32> to vector<1x384xbf16>
    %cst_14 = arith.constant dense<0.000000e+00> : vector<1x32xf32>
    %15 = tpu.matmul %14, %8, %cst_14 {dimension_numbers = #tpu.dot_dimension_numbers<[1], [0], [0], [1], [0, 0, 1, 1], [], []>} : vector<1x384xbf16>, vector<384x32xbf16>, vector<1x32xf32> -> vector<1x32xf32>
    %cst_15 = arith.constant 0.000000e+00 : f32
    %16 = vector.broadcast %cst_15 : f32 to vector<1x32xf32>
    %17 = arith.maximumf %15, %16 : vector<1x32xf32>
    %18 = arith.truncf %17 : vector<1x32xf32> to vector<1x32xbf16>
    %cst_16 = arith.constant dense<0.000000e+00> : vector<1x4xf32>
    %19 = tpu.matmul %18, %9, %cst_16 {dimension_numbers = #tpu.dot_dimension_numbers<[1], [0], [0], [1], [0, 0, 1, 1], [], []>} : vector<1x32xbf16>, vector<32x4xbf16>, vector<1x4xf32> -> vector<1x4xf32>
    %cst_17 = arith.constant dense<0xFF800000> : vector<1xf32>
    %20 = vector.multi_reduction <maximumf>, %19, %cst_17 [1] : vector<1x4xf32> to vector<1xf32>
    %21 = vector.shape_cast %20 : vector<1xf32> to vector<1x1xf32>
    %22 = vector.broadcast %21 : vector<1x1xf32> to vector<1x4xf32>
    %23 = arith.subf %19, %22 : vector<1x4xf32>
    %24 = math.exp %23 : vector<1x4xf32>
    %cst_18 = arith.constant dense<0.000000e+00> : vector<1xf32>
    %25 = vector.multi_reduction <add>, %24, %cst_18 [1] : vector<1x4xf32> to vector<1xf32>
    %26 = vector.shape_cast %25 : vector<1xf32> to vector<1x1xf32>
    %27 = vector.broadcast %26 : vector<1x1xf32> to vector<1x4xf32>
    %28 = arith.divf %24, %27 : vector<1x4xf32>
    %29 = tpu.iota {dimensions = array<i32: 1>} : vector<1x384xi32>
    %c128_i32 = arith.constant 128 : i32
    %30 = vector.broadcast %c128_i32 : i32 to vector<1x384xi32>
    %31 = arith.cmpi slt, %29, %30 : vector<1x384xi32>
    %32 = vector.extract_strided_slice %28 {offsets = [0, 0], sizes = [1, 1], strides = [1, 1]} : vector<1x4xf32> to vector<1x1xf32>
    %c192_i32 = arith.constant 192 : i32
    %33 = vector.broadcast %c192_i32 : i32 to vector<1x384xi32>
    %34 = arith.cmpi slt, %29, %33 : vector<1x384xi32>
    %35 = vector.extract_strided_slice %28 {offsets = [0, 1], sizes = [1, 1], strides = [1, 1]} : vector<1x4xf32> to vector<1x1xf32>
    %c256_i32 = arith.constant 256 : i32
    %36 = vector.broadcast %c256_i32 : i32 to vector<1x384xi32>
    %37 = arith.cmpi slt, %29, %36 : vector<1x384xi32>
    %38 = vector.extract_strided_slice %28 {offsets = [0, 2], sizes = [1, 1], strides = [1, 1]} : vector<1x4xf32> to vector<1x1xf32>
    %39 = vector.extract_strided_slice %28 {offsets = [0, 3], sizes = [1, 1], strides = [1, 1]} : vector<1x4xf32> to vector<1x1xf32>
    %40 = vector.shape_cast %38 : vector<1x1xf32> to vector<1x1xf32>
    %41 = vector.broadcast %40 : vector<1x1xf32> to vector<1x384xf32>
    %42 = vector.shape_cast %39 : vector<1x1xf32> to vector<1x1xf32>
    %43 = vector.broadcast %42 : vector<1x1xf32> to vector<1x384xf32>
    %44 = arith.select %37, %41, %43 : vector<1x384xi1>, vector<1x384xf32>
    %45 = vector.shape_cast %35 : vector<1x1xf32> to vector<1x1xf32>
    %46 = vector.broadcast %45 : vector<1x1xf32> to vector<1x384xf32>
    %47 = arith.select %34, %46, %44 : vector<1x384xi1>, vector<1x384xf32>
    %48 = vector.shape_cast %32 : vector<1x1xf32> to vector<1x1xf32>
    %49 = vector.broadcast %48 : vector<1x1xf32> to vector<1x384xf32>
    %50 = arith.select %31, %49, %47 : vector<1x384xi1>, vector<1x384xf32>
    %51 = vector.broadcast %50 : vector<1x384xf32> to vector<8x384xf32>
    %52 = arith.mulf %12, %51 : vector<8x384xf32>
    %53 = arith.truncf %52 : vector<8x384xf32> to vector<8x384xbf16>
    %cst_19 = arith.constant dense<0.000000e+00> : vector<8x128xf32>
    %54 = tpu.matmul %53, %6, %cst_19 {dimension_numbers = #tpu.dot_dimension_numbers<[1], [0], [0], [1], [0, 0, 1, 1], [], []>} : vector<8x384xbf16>, vector<384x128xbf16>, vector<8x128xf32> -> vector<8x128xf32>
    %c0_20 = arith.constant 0 : index
    %c0_21 = arith.constant 0 : index
    %c0_22 = arith.constant 0 : index
    %55 = vector.load %arg7[%c0_20, %c0_21, %c0_22] : memref<1x8x128xf32, #tpu.memory_space<vmem>>, vector<1x8x128xf32>
    %56 = vector.shape_cast %55 : vector<1x8x128xf32> to vector<8x128xf32>
    %57 = vector.shape_cast %54 : vector<8x128xf32> to vector<1x8x128xf32>
    tpu.vector_store %arg7[%c0_20, %c0_21, %c0_22], %57 {strides = array<i32>} : memref<1x8x128xf32, #tpu.memory_space<vmem>>, vector<1x8x128xf32>,
    return
  }
  func.func @transform_0(%arg0: i32, %arg1: memref<2xi32, #tpu.memory_space<smem>>) -> (i32, i32, i32) {
    %c0_i32 = arith.constant 0 : i32
    %c0_i32_0 = arith.constant 0 : i32
    %c0_i32_1 = arith.constant 0 : i32
    return %arg0, %c0_i32, %c0_i32_0 : i32, i32, i32
  }
  func.func @transform_1(%arg0: i32, %arg1: memref<2xi32, #tpu.memory_space<smem>>) -> (i32, i32, i32) {
    %0 = arith.index_cast %arg0 : i32 to index
    %1 = memref.load %arg1[%0] : memref<2xi32, #tpu.memory_space<smem>>
    %c0_i32 = arith.constant 0 : i32
    %c0_i32_0 = arith.constant 0 : i32
    %c0_i32_1 = arith.constant 0 : i32
    return %1, %c0_i32, %c0_i32_0 : i32, i32, i32
  }
  func.func @transform_2(%arg0: i32, %arg1: memref<2xi32, #tpu.memory_space<smem>>) -> (i32, i32, i32) {
    %0 = arith.index_cast %arg0 : i32 to index
    %1 = memref.load %arg1[%0] : memref<2xi32, #tpu.memory_space<smem>>
    %c0_i32 = arith.constant 0 : i32
    %c0_i32_0 = arith.constant 0 : i32
    %c0_i32_1 = arith.constant 0 : i32
    return %1, %c0_i32, %c0_i32_0 : i32, i32, i32
  }
  func.func @transform_3(%arg0: i32, %arg1: memref<2xi32, #tpu.memory_space<smem>>) -> (i32, i32, i32) {
    %0 = arith.index_cast %arg0 : i32 to index
    %1 = memref.load %arg1[%0] : memref<2xi32, #tpu.memory_space<smem>>
    %c0_i32 = arith.constant 0 : i32
    %c0_i32_0 = arith.constant 0 : i32
    %c0_i32_1 = arith.constant 0 : i32
    return %1, %c0_i32, %c0_i32_0 : i32, i32, i32
  }
  func.func @transform_4(%arg0: i32, %arg1: memref<2xi32, #tpu.memory_space<smem>>) -> (i32, i32) {
    %c0_i32 = arith.constant 0 : i32
    %c0_i32_0 = arith.constant 0 : i32
    %c0_i32_1 = arith.constant 0 : i32
    return %c0_i32, %c0_i32_0 : i32, i32
  }
  func.func @transform_5(%arg0: i32, %arg1: memref<2xi32, #tpu.memory_space<smem>>) -> (i32, i32, i32) {
    %c0_i32 = arith.constant 0 : i32
    %c0_i32_0 = arith.constant 0 : i32
    %c0_i32_1 = arith.constant 0 : i32
    return %arg0, %c0_i32, %c0_i32_0 : i32, i32, i32
  }
}

</mosaic_0001>

<bundles_post_ra>
// kernel: mta_sharemoe4_forward.1
= control target key start
LH: loop header
LB: loop body
LE: loop exit
PB: predicated region body
PF: predicated region fallthrough
CT: control target
= control target key end

     0   :  { %s1696_s0 = inlined_call_operand.vmem [shape: s32[2], index: 0, kind: input, shape index: {}]   ;;  %s1697_s1 = inlined_call_operand.vmem [shape: f32[2,8,32], index: 1, kind: input, shape index: {}]   ;;  %s1698_s2 = inlined_call_operand.vmem [shape: bf16[3,32,384], index: 2, kind: input, shape index: {}]   ;;  %s1699_s3 = inlined_call_operand.vmem [shape: bf16[3,384,128], index: 3, kind: input, shape index: {}]   ;;  %s1700_s4 = inlined_call_operand.vmem [shape: bf16[3,384,32], index: 4, kind: input, shape index: {}]   ;;  %s1701_s5 = inlined_call_operand.vmem [shape: bf16[32,4], index: 5, kind: input, shape index: {}]   ;;  %s1702_s6 = inlined_call_operand.vmem [shape: f32[2,8,128], index: 6, kind: output, shape index: {}]  }
   0x1   :  { %s11_s23 = sshll.u32 %s1696_s0, 4  ;;  %s12_s23 = int_to_ptr.vmem [resolvable:$true] %s11_s23 }
   0x2   :  { %s1485_s24 = scalar_lea.vmem %s12_s23, 16  ;;  %p1490_p1 = scmp.lt.s32.totalorder %s12_s23, %s12_s23 }
   0x3   :  { %p1486_p0 = scmp.ne.s32.totalorder %s12_s23, %s1485_s24  ;;  %p1491_p2 = scmp.lt.s32.totalorder %s1485_s24, %s1485_s24 }
   0x5   :  { %p1492_p3 = por %p1491_p2, %p1490_p1 }
   0x7   :  { %p1493_p4 = pnand %p1492_p3, %p1486_p0 }
   0x9   :  { %1496 = shalt.err (!%p1493_p4)  }
   0xa   :  { %s1507_s25 = smov [#allocation3]  }
   0xb   :  { %14 = dma.vmem_to_smem %s12_s23, 16, %s1507_s25, [#allocation2] }
   0xc   :  { %1501 = dma.done.wait [#allocation2], 16 }
   0xd   :  { %1502 = vsyncadd [#allocation2], 4294967280 }
   0xe   :  { %16 = sfence }
   0xf   :  { %s1552_s26 = smov 0  }
  0x10 LB: > { %s1558_s0 = sadd.s32 4294967295, %s1505_s26   ;;  %p1210_p5 = scmp.ge.s32.totalorder %s1505_s26, 1  ;;  %s1505_s26 = sphi %s1552_s26, %s22_s26  }
  0x11   : > { %p235_p6 = scmp.lt.s32.totalorder %s1505_s26, 3 }
  0x13   : > { %p236_p7 = pnand %p1210_p5, %p235_p6 }
  0x14   : > { %s283_s27 = sld [smem:[#allocation3 + %s1558_s0]] (!%p236_p7)  ;;  %p279_p8 = scmp.lt.s32.totalorder (!%p236_p7), %s1558_s0, 1  ;;  %v1508_v0 = vmov (!%p236_p7), 0.0   ;;  %v1509_v1 = vmov (!%p236_p7), 0   ;;  %vm1510_vm0 = vmmov (!%p236_p7), 0   ;;  %vm451_vm1 = vcmask (!%p236_p7), 261120  }
  0x15   : > { %239 = sbr.rel (%p236_p7) target bundleno = 1366 (0x556), region = 40  ;;  %1345 = vmatprep.subr.bf16.mxu1 (!%p236_p7), %v1508_v0  ;;  %487 = vmatprep.mubr.bf16.mxu0 (!%p236_p7), %v1509_v1  ;;  %s297_s28 = sld [smem:[#allocation3 + %s1558_s0]] (!%p236_p7)  ;;  %v1455_v48 = vld [vmem:[%s1701_s5] sm:$0xff] (!%p236_p7)   ;;  %v1456_v49 = vld [vmem:[%s1701_s5 + $0x8] sm:$0xff] (!%p236_p7)   ;;  %vm823_vm2 = vcmask (!%p236_p7), 24576  }
  0x16   : > { %1349 = vmatprep.mubr.msk.bf16.mxu1 (!%p236_p7), %vm1510_vm0, %v1508_v0  ;;  %1421 = vset.pattern.permute.xlu0 (!%p236_p7), %v1509_v1  ;;  %s290_s22 = sld [smem:[#allocation3 + %s1558_s0]] (!%p236_p7) }
  0x1a   : > { %p284_p9 = scmp.lt.s32.totalorder (!%p236_p7), %s283_s27, 2 }
  0x1b   : > { %p298_p10 = scmp.lt.s32.totalorder (!%p236_p7), %s297_s28, 2 }
  0x1c   : > { %s1569_s29 = scalar_select %p279_p8, %s1558_s0, 1 }
  0x1d   : > { %s1704_s27 = smov (!%p284_p9, %s283_s27), 2  ;;  %s1706_s28 = smov (!%p298_p10, %s297_s28), 2 }
  0x1e   : > { %s1211_s30 = sshll.u32 %s1569_s29, 3  ;;  %s1401_s7 = smul.u32 48, %s1704_s27 }
  0x1f   : > { %s282_s10 = scalar_lea.vmem %s1697_s1, %s1211_s30  ;;  %s1403_s11 = smul.u32 192, %s1706_s28 }
  0x20   : > { %s288_s14 = scalar_lea.vmem %s1698_s2, %s1401_s7  ;;  %v309_v4 = vld [vmem:[%s282_s10] sm:$0xff]  ;;  %p291_p11 = scmp.lt.s32.totalorder %s290_s22, 2 }
  0x21   : > { %v1423_v2 = vld [vmem:[%s288_s14 + $0x4] ss:$12 sps:$4 sm:$0xff]   ;;  %v1425_v3 = vld [vmem:[%s288_s14] ss:$12 sps:$4 sm:$0xff]   ;;  %v1426_v5 = vld [vmem:[%s288_s14 + $0x8] ss:$12 sps:$4 sm:$0xff]   ;;  %s1583_s17 = scalar_lea.vmem %s1700_s4, %s1403_s11  ;;  %v310_v10 = vpack.c.bf16 %v309_v4, %v309_v4  ;;  %s307_s7 = scalar_lea.vmem %s1702_s6, %s1211_s30 }
  0x22   : > { %455 = vmatprep.subr.bf16.mxu0 %v1423_v2  ;;  %v1427_v6 = vld [vmem:[%s288_s14 + $0x1c] ss:$12 sps:$4 sm:$0xff]   ;;  %v1429_v7 = vld [vmem:[%s288_s14 + $0x18] ss:$12 sps:$4 sm:$0xff]   ;;  %1346 = vmatpush3.bf16.msra.mxu1 %v1426_v5  ;;  %v1430_v8 = vld [vmem:[%s288_s14 + $0x20] ss:$12 sps:$4 sm:$0xff]  }
  0x23   : > { %456 = vmatpush1.bf16.msra.mxu0 %v1425_v3  ;;  %1347 = vmatprep.subr.bf16.mxu1 %v1508_v0  ;;  %v1431_v9 = vld [vmem:[%s1583_s17 + $0x40] sm:$0xff]   ;;  %v1434_v13 = vld [vmem:[%s1583_s17 + $0x48] sm:$0xff]   ;;  %v1437_v16 = vld [vmem:[%s1583_s17 + $0x50] sm:$0xff]   ;;  %s1708_s22 = smov (!%p291_p11, %s290_s22), 2 }
  0x24   : > { %457 = vmatprep.subr.bf16.mxu0 %v1427_v6  ;;  %v1432_v11 = vld [vmem:[%s1583_s17] sm:$0xff]   ;;  %v1435_v14 = vld [vmem:[%s1583_s17 + $0x8] sm:$0xff]   ;;  %v1438_v17 = vld [vmem:[%s1583_s17 + $0x10] sm:$0xff]   ;;  %s1402_s23 = smul.u32 192, %s1708_s22 }
  0x25   : > { %v1433_v12 = vld [vmem:[%s1583_s17 + $0x80] sm:$0xff]   ;;  %v1436_v15 = vld [vmem:[%s1583_s17 + $0x88] sm:$0xff]   ;;  %v1439_v18 = vld [vmem:[%s1583_s17 + $0x90] sm:$0xff]  }
  0x26   : > { %1348 = vmatpush3.bf16.msra.mxu1 %v1430_v8  ;;  %v1440_v19 = vld [vmem:[%s1583_s17 + $0x58] sm:$0xff]   ;;  %v1443_v22 = vld [vmem:[%s1583_s17 + $0x60] sm:$0xff]   ;;  %v1446_v25 = vld [vmem:[%s1583_s17 + $0x68] sm:$0xff]   ;;  %s1652_s27 = scalar_lea.vmem %s1699_s3, %s1402_s23 }
  0x27   : > { %458 = vmatpush1.bf16.msra.mxu0 %v1429_v7  ;;  %1353 = vmatprep.subr.bf16.mxu1 %v1508_v0  ;;  %v1441_v20 = vld [vmem:[%s1583_s17 + $0x18] sm:$0xff]   ;;  %v1444_v23 = vld [vmem:[%s1583_s17 + $0x20] sm:$0xff]   ;;  %v1447_v26 = vld [vmem:[%s1583_s17 + $0x28] sm:$0xff]  }
  0x28   : > { %1280 = vmatprep.subr.bf16.mxu0 %v1431_v9  ;;  %v1442_v21 = vld [vmem:[%s1583_s17 + $0x98] sm:$0xff]   ;;  %v1445_v24 = vld [vmem:[%s1583_s17 + $0xa0] sm:$0xff]   ;;  %v1448_v27 = vld [vmem:[%s1583_s17 + $0xa8] sm:$0xff]   ;;  %v1511_v9 = vmov 2  }
  0x29   : > { %1350 = vmatmul.mubr.msk.bf16.vlgmr.msra.gmra.mrb[0].mxu1 %vm451_vm1, %v310_v10  ;;  %v1449_v28 = vld [vmem:[%s1583_s17 + $0x70] sm:$0xff]   ;;  %v1452_v31 = vld [vmem:[%s1583_s17 + $0x78] sm:$0xff]   ;;  %1419 = vset.pattern.permute.xlu1 %v1511_v9 }
  0x2a   : > { %1222 = vmatmul.mubr.msk.bf16.vlgmr.msra.gmra.mrb[0].mxu0 %vm451_vm1, %v310_v10  ;;  %1354 = vmatpush3.bf16.msra.mxu1 %v1433_v12  ;;  %v1450_v29 = vld [vmem:[%s1583_s17 + $0x30] sm:$0xff]   ;;  %v1453_v32 = vld [vmem:[%s1583_s17 + $0x38] sm:$0xff]   ;;  %v1457_v10 = vld [vmem:[%s1652_s27 + $0x40] sm:$0xff]  }
  0x2b   : > { %1281 = vmatpush3.bf16.msra.mxu0 %v1432_v11  ;;  %1355 = vmatprep.subr.bf16.mxu1 %v1508_v0  ;;  %v1451_v30 = vld [vmem:[%s1583_s17 + $0xb0] sm:$0xff]   ;;  %v1454_v33 = vld [vmem:[%s1583_s17 + $0xb8] sm:$0xff]   ;;  %v1458_v11 = vld [vmem:[%s1652_s27] sm:$0xff]  }
  0x2c   : > { %1282 = vmatprep.subr.bf16.mxu0 %v1434_v13  ;;  %1369 = vmatprep.mubr.msk.bf16.mxu1 %vm1510_vm0, %v1508_v0  ;;  %v1459_v12 = vld [vmem:[%s1652_s27 + $0x48] sm:$0xff]   ;;  %v1460_v13 = vld [vmem:[%s1652_s27 + $0x80] sm:$0xff]  }
  0x2e   : > { %1356 = vmatpush3.bf16.msra.mxu1 %v1436_v15  ;;  %v1462_v15 = vld [vmem:[%s1652_s27 + $0x50] sm:$0xff]  }
  0x2f   : > { %1283 = vmatpush3.bf16.msra.mxu0 %v1435_v14  ;;  %1357 = vmatprep.subr.bf16.mxu1 %v1508_v0  ;;  %v1461_v14 = vld [vmem:[%s1652_s27 + $0x8] sm:$0xff]  }
  0x30   : > { %1284 = vmatprep.subr.bf16.mxu0 %v1437_v16  ;;  %v1463_v16 = vld [vmem:[%s1652_s27 + $0x88] sm:$0xff]  }
  0x32   : > { %1358 = vmatpush3.bf16.msra.mxu1 %v1439_v18  ;;  %v1465_v18 = vld [vmem:[%s1652_s27 + $0x58] sm:$0xff]  }
  0x33   : > { %1285 = vmatpush3.bf16.msra.mxu0 %v1438_v17  ;;  %1359 = vmatprep.subr.bf16.mxu1 %v1508_v0  ;;  %v1464_v17 = vld [vmem:[%s1652_s27 + $0x10] sm:$0xff]  }
  0x34   : > { %1286 = vmatprep.subr.bf16.mxu0 %v1440_v19  ;;  %v1466_v19 = vld [vmem:[%s1652_s27 + $0x90] sm:$0xff]  }
  0x36   : > { %1360 = vmatpush3.bf16.msra.mxu1 %v1442_v21  ;;  %v1468_v21 = vld [vmem:[%s1652_s27 + $0x60] sm:$0xff]  }
  0x37   : > { %1287 = vmatpush3.bf16.msra.mxu0 %v1441_v20  ;;  %1361 = vmatprep.subr.bf16.mxu1 %v1508_v0  ;;  %v1467_v20 = vld [vmem:[%s1652_s27 + $0x18] sm:$0xff]  }
  0x38   : > { %1288 = vmatprep.subr.bf16.mxu0 %v1443_v22  ;;  %v1469_v22 = vld [vmem:[%s1652_s27 + $0x98] sm:$0xff]  }
  0x3a   : > { %1362 = vmatpush3.bf16.msra.mxu1 %v1445_v24 }
  0x3b   : > { %1289 = vmatpush3.bf16.msra.mxu0 %v1444_v23  ;;  %1363 = vmatprep.subr.bf16.mxu1 %v1508_v0  ;;  %v1470_v23 = vld [vmem:[%s1652_s27 + $0x20] sm:$0xff]  }
  0x3c   : > { %1290 = vmatprep.subr.bf16.mxu0 %v1446_v25 }
  0x3e   : > { %1364 = vmatpush3.bf16.msra.mxu1 %v1448_v27  ;;  %v1471_v27 = vld [vmem:[%s1652_s27 + $0x68] sm:$0xff]  }
  0x3f   : > { %1291 = vmatpush3.bf16.msra.mxu0 %v1447_v26  ;;  %1365 = vmatprep.subr.bf16.mxu1 %v1508_v0 }
  0x40   : > { %1292 = vmatprep.subr.bf16.mxu0 %v1449_v28  ;;  %v1472_v28 = vld [vmem:[%s1652_s27 + $0xa0] sm:$0xff]  }
  0x42   : > { %1366 = vmatpush3.bf16.msra.mxu1 %v1451_v30  ;;  %v1474_v30 = vld [vmem:[%s1652_s27 + $0x70] sm:$0xff]  }
  0x43   : > { %1293 = vmatpush3.bf16.msra.mxu0 %v1450_v29  ;;  %1367 = vmatprep.subr.bf16.mxu1 %v1508_v0  ;;  %v1473_v29 = vld [vmem:[%s1652_s27 + $0x28] sm:$0xff]  }
  0x44   : > { %1294 = vmatprep.subr.bf16.mxu0 %v1452_v31  ;;  %v1475_v31 = vld [vmem:[%s1652_s27 + $0xa8] sm:$0xff]  }
  0x46   : > { %1368 = vmatpush3.bf16.msra.mxu1 %v1454_v33  ;;  %v1476_v33 = vld [vmem:[%s1652_s27 + $0x30] sm:$0xff]  }
  0x47   : > { %1295 = vmatpush3.bf16.msra.mxu0 %v1453_v32  ;;  %1314 = vmatprep.subr.bf16.mxu1 %v1457_v10  ;;  %v1512_v32 = vmov 1  }
  0x48   : > { %1373 = vmatprep.subr.bf16.mxu0 %v1508_v0 }
  0xfc   : > { %v530_v37 = vpop.f32.mrb[0].mxu1 }
  0xfd   : > { %v489_v34 = vpop.f32.mrb[0].mxu0  ;;  %v1627_v40 = vmax.f32 %v530_v37, 0.0  ;;  %v1351_v41 = vpop.f32.mrb[1].mxu1  ;;  %v1479_v37 = vld [vmem:[%s1652_s27 + $0x38] sm:$0xff]  }
  0xfe   : > { %v1623_v35 = vmax.f32 %v489_v34, 0.0  ;;  %v491_v36 = vpop.f32.mrb[1].mxu0  ;;  %v533_v43 = vpop.f32.mrb[2].mxu1  ;;  %v1477_v34 = vld [vmem:[%s1652_s27 + $0x78] sm:$0xff]  }
  0xff   : > { %v1625_v38 = vmax.f32 %v491_v36, 0.0  ;;  %v493_v39 = vpop.f32.mrb[2].mxu0  ;;  %v541_v45 = vpack.c.bf16 %v1627_v40, %v1627_v40  ;;  %v1352_v46 = vpop.f32.mrb[3].mxu1  ;;  %v1478_v36 = vld [vmem:[%s1652_s27 + $0xb0] sm:$0xff]   ;;  %v1480_v41 = vld [vmem:[%s1652_s27 + $0xb8] sm:$0xff]  }
 0x100   : > { %v494_v42 = vpop.f32.mrb[3].mxu0  ;;  %v539_v47 = vpack.c.bf16 %v1623_v35, %v1623_v35  ;;  %v1513_v39 = vmov 3  }
 0x101   : > { %v540_v44 = vpack.c.bf16 %v1625_v38, %v1625_v38  ;;  %1370 = vmatmul.mubr.bf16.vlgmr.msra.gmra.mrb[4].mxu1 %v541_v45  ;;  %v835_v42 = vlaneseq }
 0x102   : > { %1315 = vmatpush3.bf16.msra.mxu1 %v1458_v11 }
 0x103   : > { %718 = vmatprep.mubr.bf16.mxu0 %v540_v44  ;;  %1316 = vmatprep.subr.bf16.mxu1 %v1459_v12  ;;  %v836_v43 = vand.u32 127, %v835_v42  ;;  %v875_v44 = vshrl.u32 %v835_v42, 7 }
 0x104   : > { %719 = vmatmul.mubr.bf16.vlgmr.msra.gmra.mrb[4].mxu0 %v539_v47 }
 0x105   : > { %1377 = vmatprep.mubr.msk.bf16.mxu0 %vm1510_vm0, %v1508_v0  ;;  %1374 = vmatpush3.bf16.msra.mxu0 %v1455_v48  ;;  %v837_v45 = vadd.s32 128, %v836_v43  ;;  %v876_v46 = vsub.s32 0, %v875_v44 }
 0x106   : > { %1375 = vmatprep.subr.bf16.mxu0 %v1508_v0  ;;  %1317 = vmatpush3.bf16.msra.mxu1 %v1461_v14 }
 0x107   : > { %1318 = vmatprep.subr.bf16.mxu1 %v1462_v15  ;;  %vm843_vm3 = vcmp.lt.s32.totalorder %v837_v45, 192 }
 0x109   : > { %1376 = vmatpush3.bf16.msra.mxu0 %v1456_v49 }
 0x10a   : > { %1381 = vmatprep.subr.bf16.mxu0 %v1508_v0  ;;  %1319 = vmatpush3.bf16.msra.mxu1 %v1464_v17 }
 0x10b   : > { %1320 = vmatprep.subr.bf16.mxu1 %v1465_v18 }
 0x10e   : > { %1321 = vmatpush3.bf16.msra.mxu1 %v1467_v20 }
 0x10f   : > { %1322 = vmatprep.subr.bf16.mxu1 %v1468_v21 }
 0x112   : > { %1323 = vmatpush3.bf16.msra.mxu1 %v1470_v23 }
 0x113   : > { %1324 = vmatprep.subr.bf16.mxu1 %v1471_v27 }
 0x116   : > { %1325 = vmatpush3.bf16.msra.mxu1 %v1473_v29 }
 0x117   : > { %1326 = vmatprep.subr.bf16.mxu1 %v1474_v30 }
 0x11a   : > { %1327 = vmatpush3.bf16.msra.mxu1 %v1476_v33 }
 0x11b   : > { %1328 = vmatprep.subr.bf16.mxu1 %v1477_v34 }
 0x11e   : > { %1329 = vmatpush3.bf16.msra.mxu1 %v1479_v37 }
 0x1d4   : > { %v760_v50 = vpop.f32.mrb[4].mxu1 }
 0x1d5   : > { %v1371_v52 = vpop.f32.mrb[5].mxu1 }
 0x1d6   : > { %v763_v54 = vpop.f32.mrb[6].mxu1 }
 0x1d7   : > { %v1296_v51 = vpop.f32.mrb[4].mxu0  ;;  %v1372_v57 = vpop.f32.mrb[7].mxu1 }
 0x1d8   : > { %v1297_v53 = vpop.f32.mrb[5].mxu0 }
 0x1d9   : > { %v1298_v55 = vadd.f32 %v1297_v53, %v1296_v51  ;;  %v1299_v56 = vpop.f32.mrb[6].mxu0 }
 0x1da   : > { %v1300_v58 = vpop.f32.mrb[7].mxu0 }
 0x1db   : > { %v761_v59 = vadd.f32 %v1298_v55, %v760_v50 }
 0x1dd   : > { %v766_v60 = vmax.f32 %v761_v59, 0.0 }
 0x1df   : > { %v767_v61 = vpack.c.bf16 %v766_v60, %v766_v60 }
 0x1e1   : > { %1378 = vmatmul.mubr.msk.bf16.vlgmr.msra.gmra.mrb[8].mxu0 %vm451_vm1, %v767_v61 }
 0x1e2   : > { %1397 = vmatprep.mubr.msk.bf16.mxu0 %vm1510_vm0, %v1508_v0  ;;  %1382 = vmatpush3.bf16.msra.mxu0 %v1460_v13 }
 0x1e3   : > { %1383 = vmatprep.subr.bf16.mxu0 %v1508_v0 }
 0x1e6   : > { %1384 = vmatpush3.bf16.msra.mxu0 %v1463_v16 }
 0x1e7   : > { %1385 = vmatprep.subr.bf16.mxu0 %v1508_v0 }
 0x1ea   : > { %1386 = vmatpush3.bf16.msra.mxu0 %v1466_v19 }
 0x1eb   : > { %1387 = vmatprep.subr.bf16.mxu0 %v1508_v0 }
 0x1ee   : > { %1388 = vmatpush3.bf16.msra.mxu0 %v1469_v22 }
 0x1ef   : > { %1389 = vmatprep.subr.bf16.mxu0 %v1508_v0 }
 0x1f2   : > { %1390 = vmatpush3.bf16.msra.mxu0 %v1472_v28 }
 0x1f3   : > { %1391 = vmatprep.subr.bf16.mxu0 %v1508_v0 }
 0x1f6   : > { %1392 = vmatpush3.bf16.msra.mxu0 %v1475_v31 }
 0x1f7   : > { %1393 = vmatprep.subr.bf16.mxu0 %v1508_v0 }
 0x1fa   : > { %1394 = vmatpush3.bf16.msra.mxu0 %v1478_v36 }
 0x1fb   : > { %1395 = vmatprep.subr.bf16.mxu0 %v1508_v0 }
 0x1fe   : > { %1396 = vmatpush3.bf16.msra.mxu0 %v1480_v41 }
 0x2b4   : > { %v817_v62 = vpop.f32.mrb[8].mxu0 }
 0x2b5   : > { %v1379_v63 = vpop.f32.mrb[9].mxu0  ;;  %v824_v1 = vsel %vm823_vm2, %v817_v62, -inf }
 0x2b6   : > { %825 = vmax.xlane.f32.xlu0 %v824_v1  ;;  %v820_v2 = vpop.f32.mrb[10].mxu0 }
 0x2b7   : > { %v1380_v3 = vpop.f32.mrb[11].mxu0 }
 0x343   : > { %v826_v4 = vpop.xlane.xlu0 %825 }
 0x344   : > { %v827_v5 = vsub.f32 %v817_v62, %v826_v4 }
 0x346   : > { %v828_v6 = vmul.f32 1.442695, %v827_v5 }
 0x348   : > { %1481 = vpow2.f32 %v828_v6 }
 0x352   : > { %v1482_v7 = vpop.eup %1481 }
 0x353   : > { %v830_v8 = vsel %vm823_vm2, %v1482_v7, 0.0 }
 0x354   : > { %831 = vadd.xlane.f32.xlu0 %v830_v8 }
 0x3e1   : > { %v832_v24 = vpop.xlane.xlu0 %831 }
 0x3e2   : > { %1483 = vrcp.f32 %v832_v24 }
 0x3ec   : > { %v1484_v25 = vpop.eup %1483 }
 0x3ed   : > { %v834_v26 = vmul.f32 %v1484_v25, %v1482_v7 }
 0x3ef   : > { %868 = vperm.xlu0 %1421, %v834_v26   ;;  %850 = vperm.xlu1 %1419, %v834_v26  }
 0x3f3   : > { %1420 = vset.pattern.permute.xlu1 %v1512_v32 }
 0x3f4   : > { %861 = vperm.xlu1 %1420, %v834_v26  }
 0x3f8   : > { %1422 = vset.pattern.permute.xlu1 %v1513_v39 }
 0x3f9   : > { %854 = vperm.xlu1 %1422, %v834_v26  }
 0x46e   : > { %v851_v47 = vpop.permute.xlu1 %850  ;;  %v869_v48 = vpop.permute.xlu0 %868 }
 0x46f   : > { %v877_v49 = vrot.slane %v869_v48, %v876_v46 }
 0x471   : > { %v886_v53 = vmul.f32 %v877_v49, %v1623_v35 }
 0x473   : > { %v862_v50 = vpop.permute.xlu1 %861  ;;  %v889_v57 = vpack.c.bf16 %v886_v53, %v886_v53 }
 0x474   : > { %v865_v51 = vsel %vm843_vm3, %v862_v50, %v851_v47 }
 0x475   : > { %v881_v52 = vrot.slane %v865_v51, %v876_v46 }
 0x477   : > { %v887_v54 = vmul.f32 %v881_v52, %v1625_v38 }
 0x478   : > { %v855_v0 = vpop.permute.xlu1 %854 }
 0x479   : > { %v885_v55 = vrot.slane %v855_v0, %v876_v46  ;;  %v890_v56 = vpack.c.bf16 %v887_v54, %v887_v54 }
 0x47b   : > { %v888_v58 = vmul.f32 %v885_v55, %v1627_v40  ;;  %1068 = vmatprep.mubr.bf16.mxu1 %v890_v56 }
 0x47c   : > { %1069 = vmatmul.mubr.bf16.vlgmr.msra.gmra.mrb[8].mxu1 %v889_v57 }
 0x47d   : > { %v891_v59 = vpack.c.bf16 %v888_v58, %v888_v58 }
 0x47f   : > { %1398 = vmatmul.mubr.bf16.vlgmr.msra.gmra.mrb[12].mxu0 %v891_v59 }
 0x54f   : > { %v1330_v60 = vpop.f32.mrb[8].mxu1 }
 0x550   : > { %v1331_v61 = vpop.f32.mrb[9].mxu1 }
 0x551   : > { %v1332_v62 = vadd.f32 %v1331_v61, %v1330_v60  ;;  %v1333_v63 = vpop.f32.mrb[10].mxu1 }
 0x552   : > { %v1334_v1 = vpop.f32.mrb[11].mxu1  ;;  %v1110_v35 = vpop.f32.mrb[12].mxu0 }
 0x553   : > { %v1111_v38 = vadd.f32 %v1332_v62, %v1110_v35  ;;  %v1399_v2 = vpop.f32.mrb[13].mxu0 }
 0x554   : > { %v1113_v3 = vpop.f32.mrb[14].mxu0 }
 0x555   : > { %1116 = vst [vmem:[%s307_s7] sm:$0xff] %v1111_v38  ;;  %v1400_v40 = vpop.f32.mrb[15].mxu0 }
 0x556 PF: > { %s22_s26 = sadd.s32 1, %s1505_s26  }
 0x557   : > { %p19_p12 = scmp.ge.s32.totalorder %s22_s26, 4  }
 0x559   :  { %21 = sbr.rel (!%p19_p12) target bundleno = 16 (0x10), region = 79 }

</bundles_post_ra>
